<compile_context>
chip_gen: v7x
topology: tpu7x:2x2x1
jax: 0.10.0
libtpu: 0.0.40
codegen_flags: <defaults>
</compile_context>

<pallas_src>
import jax
import jax.numpy as jnp
from jax import lax
from jax.experimental import pallas as pl
from jax.experimental.pallas import tpu as pltpu


def _predictor_kernel(pooled_ref, w_ref, b_ref, o_ref):
    # Per grid step j (one head):
    #   pooled_ref: (1, n, c)         pooled features for this head
    #   w_ref:      (1, c, feat_dim)  fc[j] weight (fc_global for the last j)
    #   b_ref:      (1, 1, feat_dim)  bias (f32)
    #   o_ref:      (1, n, feat_dim)  L2-normalized output (f32)
    f = jnp.dot(
        pooled_ref[0], w_ref[0], preferred_element_type=jnp.float32
    ) + b_ref[0]                                           # (n, feat_dim) f32

    # f.div(f.norm(p=2, dim=1, keepdim=True)): L2 normalize along features.
    # rsqrt (EUP slot) + multiply instead of sqrt + divide.
    # NOTE: no epsilon, matching the PyTorch reference (all-zero rows -> NaN).
    inv_norm = lax.rsqrt(jnp.sum(f * f, axis=-1, keepdims=True))
    o_ref[0] = (f * inv_norm).astype(o_ref.dtype)


def fastrcnn_predictor_part(x_nchw, weights, biases):
    """x_nchw: (n, 2048, h, w) features (any float dtype; accumulation is f32).
    weights: (num_parts+1, 2048, feat_dim) -- fc[0..P-1] then fc_global,
             pre-transposed so the kernel computes pooled @ W.  Hand this in
             bf16 (cast once, outside the jit) for the fast path, or f32 if
             ReID accuracy matters more than ~2 us.
    biases:  (num_parts+1, 1, feat_dim).
    Returns the stacked (num_parts+1, n, feat_dim) array; axis 0 matches the
    PyTorch module's output list order (parts 0..P-1, then the global feat)."""
    n, c, h, w = x_nchw.shape
    num_out, c_w, feat_dim = weights.shape
    num_parts = num_out - 1
    assert c == c_w
    # PyTorch slices x[:, :, j:j+1, :]; j must be a valid spatial row.
    assert num_parts <= h, "num_parts must not exceed the feature-map height"

    # AdaptiveAvgPool2d(1) over x[:, :, j:j+1, :] == mean over width of row j.
    # Read in the input's native dtype, accumulate in f32 (no f32 feature copy).
    row_pool = jnp.mean(x_nchw, axis=3, dtype=jnp.float32)           # (n, c, h)
    parts = jnp.transpose(row_pool[:, :, :num_parts], (2, 0, 1))     # (P, n, c)
    # Global AdaptiveAvgPool2d(1): mean over (h, w) == mean over h of row means.
    glob = jnp.mean(row_pool, axis=2)[None]                          # (1, n, c)
    pooled = jnp.concatenate([parts, glob], axis=0)                  # (num_out, n, c)

    # Match the (tiny) pooled LHS to the weight dtype so a bf16 weight stack
    # uses the MXU bf16 path; f32 weights keep everything f32.
    pooled = pooled.astype(weights.dtype)
    biases_f32 = biases.astype(jnp.float32)

    out = pl.pallas_call(
        _predictor_kernel,
        out_shape=jax.ShapeDtypeStruct((num_out, n, feat_dim), jnp.float32),
        grid=(num_out,),
        in_specs=[
            pl.BlockSpec((1, n, c), lambda j: (j, 0, 0)),
            pl.BlockSpec((1, c, feat_dim), lambda j: (j, 0, 0)),
            pl.BlockSpec((1, 1, feat_dim), lambda j: (j, 0, 0)),
        ],
        out_specs=pl.BlockSpec((1, n, feat_dim), lambda j: (j, 0, 0)),
        compiler_params=pltpu.CompilerParams(
            # Heads are independent: double-buffered weight DMA on all chips,
            # sharded across the two TensorCores on v7x (no-op on v5e/v6e).
            dimension_semantics=("parallel",),
        ),
    )(pooled, weights, biases_f32)

    return out


fastrcnn_predictor_part_jit = jax.jit(fastrcnn_predictor_part)


def _reference(x_nchw, weights, biases):
    """Pure-JAX (f32) reference mirroring the PyTorch forward exactly."""
    num_out = weights.shape[0]
    num_parts = num_out - 1
    outs = []
    for j in range(num_parts):
        f = jnp.mean(x_nchw[:, :, j:j + 1, :], axis=(2, 3))   # avgpool of row j
        f = f @ weights[j] + biases[j, 0]
        f = f / jnp.linalg.norm(f, axis=1, keepdims=True)
        outs.append(f)
    fg = jnp.mean(x_nchw, axis=(2, 3)) @ weights[-1] + biases[-1, 0]
    fg = fg / jnp.linalg.norm(fg, axis=1, keepdims=True)
    outs.append(fg)
    return outs


if __name__ == "__main__":
    # Small shapes consistent with the module: channel count is fixed at 2048
    # by nn.Linear(2048, feat_dim); spatial / batch / part counts stay small.
    n, c, h, w = 2, 2048, 4, 8
    num_parts, feat_dim = 3, 128     # config.MODEL.REID.{NUM_PARTS, FEAT_DIM}

    key = jax.random.PRNGKey(0)
    kx, kw, kb = jax.random.split(key, 3)
    x = jax.random.normal(kx, (n, c, h, w), jnp.float32)
    # Stack [fc[0], ..., fc[P-1], fc_global], pre-transposed to (c, feat_dim).
    weights_f32 = jax.random.normal(kw, (num_parts + 1, c, feat_dim), jnp.float32) * 0.01
    biases = jax.random.normal(kb, (num_parts + 1, 1, feat_dim), jnp.float32) * 0.01

    # Deliberate accuracy/latency trade: bf16 weights, cast ONCE outside the
    # jit (the hot path never re-reads/re-writes the f32 weight slab).
    weights_bf16 = jax.device_put(weights_f32.astype(jnp.bfloat16))

    out = fastrcnn_predictor_part_jit(x, weights_bf16, biases)
    out = jax.block_until_ready(out)
    assert out.shape == (num_parts + 1, n, feat_dim)

    refs = _reference(x, weights_f32, biases)
    for i, r in enumerate(refs):
        o = out[i]
        assert o.shape == (n, feat_dim)
        err = float(jnp.max(jnp.abs(o - r)))
        # Tolerance loosened for the bf16 weight/LHS cast (f32 accumulation).
        assert jnp.allclose(o, r, rtol=2e-2, atol=2e-2), err

    print("KERNEL_OK")
</pallas_src>

<mosaic_0001>
module attributes {stable_mosaic.version = 11 : i64} {
  func.func @_predictor_kernel(%arg0: i32, %arg1: memref<1x2x2048xbf16, #tpu.memory_space<vmem>>, %arg2: memref<1x2048x128xbf16, #tpu.memory_space<vmem>>, %arg3: memref<1x1x128xf32, #tpu.memory_space<vmem>>, %arg4: memref<1x2x128xf32, #tpu.memory_space<vmem>>) attributes {dimension_semantics = [#tpu.dimension_semantics<parallel>], iteration_bounds = array<i64: 4>, scalar_prefetch = 0 : i64, scratch_operands = 0 : i64, tpu.core_type = #tpu.core_type<tc>, window_params = [{transform_indices = @transform_0, window_bounds = array<i64: 1, 2, 2048>}, {transform_indices = @transform_1, window_bounds = array<i64: 1, 2048, 128>}, {transform_indices = @transform_2, window_bounds = array<i64: 1, 1, 128>}, {transform_indices = @transform_3, window_bounds = array<i64: 1, 2, 128>}]} {
    %c0 = arith.constant 0 : index
    %c0_0 = arith.constant 0 : index
    %c0_1 = arith.constant 0 : index
    %0 = vector.load %arg1[%c0, %c0_0, %c0_1] : memref<1x2x2048xbf16, #tpu.memory_space<vmem>>, vector<1x2x2048xbf16>
    %1 = vector.shape_cast %0 : vector<1x2x2048xbf16> to vector<2x2048xbf16>
    %c0_2 = arith.constant 0 : index
    %c0_3 = arith.constant 0 : index
    %c0_4 = arith.constant 0 : index
    %2 = vector.load %arg2[%c0_2, %c0_3, %c0_4] : memref<1x2048x128xbf16, #tpu.memory_space<vmem>>, vector<1x2048x128xbf16>
    %3 = vector.shape_cast %2 : vector<1x2048x128xbf16> to vector<2048x128xbf16>
    %cst = arith.constant dense<0.000000e+00> : vector<2x128xf32>
    %4 = tpu.matmul %1, %3, %cst {dimension_numbers = #tpu.dot_dimension_numbers<[1], [0], [0], [1], [0, 0, 1, 1], [], []>} : vector<2x2048xbf16>, vector<2048x128xbf16>, vector<2x128xf32> -> vector<2x128xf32>
    %c0_5 = arith.constant 0 : index
    %c0_6 = arith.constant 0 : index
    %c0_7 = arith.constant 0 : index
    %5 = vector.load %arg3[%c0_5, %c0_6, %c0_7] : memref<1x1x128xf32, #tpu.memory_space<vmem>>, vector<1x1x128xf32>
    %6 = vector.shape_cast %5 : vector<1x1x128xf32> to vector<1x128xf32>
    %7 = vector.broadcast %6 : vector<1x128xf32> to vector<2x128xf32>
    %8 = arith.addf %4, %7 : vector<2x128xf32>
    %9 = arith.mulf %8, %8 : vector<2x128xf32>
    %cst_8 = arith.constant dense<0.000000e+00> : vector<2xf32>
    %10 = vector.multi_reduction <add>, %9, %cst_8 [1] : vector<2x128xf32> to vector<2xf32>
    %11 = vector.shape_cast %10 : vector<2xf32> to vector<2x1xf32>
    %12 = math.rsqrt %11 : vector<2x1xf32>
    %13 = vector.broadcast %12 : vector<2x1xf32> to vector<2x128xf32>
    %14 = arith.mulf %8, %13 : vector<2x128xf32>
    %c0_9 = arith.constant 0 : index
    %c0_10 = arith.constant 0 : index
    %c0_11 = arith.constant 0 : index
    %15 = vector.load %arg4[%c0_9, %c0_10, %c0_11] : memref<1x2x128xf32, #tpu.memory_space<vmem>>, vector<1x2x128xf32>
    %16 = vector.shape_cast %15 : vector<1x2x128xf32> to vector<2x128xf32>
    %17 = vector.shape_cast %14 : vector<2x128xf32> to vector<1x2x128xf32>
    tpu.vector_store %arg4[%c0_9, %c0_10, %c0_11], %17 {strides = array<i32>} : memref<1x2x128xf32, #tpu.memory_space<vmem>>, vector<1x2x128xf32>,
    return
  }
  func.func @transform_0(%arg0: i32) -> (i32, i32, i32) {
    %c0_i32 = arith.constant 0 : i32
    %c0_i32_0 = arith.constant 0 : i32
    %c0_i32_1 = arith.constant 0 : i32
    return %arg0, %c0_i32, %c0_i32_0 : i32, i32, i32
  }
  func.func @transform_1(%arg0: i32) -> (i32, i32, i32) {
    %c0_i32 = arith.constant 0 : i32
    %c0_i32_0 = arith.constant 0 : i32
    %c0_i32_1 = arith.constant 0 : i32
    return %arg0, %c0_i32, %c0_i32_0 : i32, i32, i32
  }
  func.func @transform_2(%arg0: i32) -> (i32, i32, i32) {
    %c0_i32 = arith.constant 0 : i32
    %c0_i32_0 = arith.constant 0 : i32
    %c0_i32_1 = arith.constant 0 : i32
    return %arg0, %c0_i32, %c0_i32_0 : i32, i32, i32
  }
  func.func @transform_3(%arg0: i32) -> (i32, i32, i32) {
    %c0_i32 = arith.constant 0 : i32
    %c0_i32_0 = arith.constant 0 : i32
    %c0_i32_1 = arith.constant 0 : i32
    return %arg0, %c0_i32, %c0_i32_0 : i32, i32, i32
  }
}

</mosaic_0001>

<bundles_post_ra>
// kernel: fastrcnn_predictor_part.1
= control target key start
LH: loop header
LB: loop body
LE: loop exit
PB: predicated region body
PF: predicated region fallthrough
CT: control target
= control target key end

     0   :  { %8 = vsyncpa [#allocation3], 0  ;;  %s2875_s0 = inlined_call_operand.vmem [shape: bf16[4,2,2048], index: 0, kind: input, shape index: {}]   ;;  %s2876_s1 = inlined_call_operand.hbm [shape: bf16[4,2048,128], index: 1, kind: input, shape index: {}]   ;;  %s2877_s2 = inlined_call_operand.hbm [shape: f32[4,1,128], index: 2, kind: input, shape index: {}]   ;;  %s2878_s3 = inlined_call_operand.hbm [shape: f32[4,2,128], index: 3, kind: output, shape index: {}]  }
   0x1   :  { %10 = vsyncpa [#allocation3 + $0x1], 0 }
   0x2   :  { %11 = vsyncpa [#allocation6], 0 }
   0x3   :  { %13 = vsyncpa [#allocation6 + $0x1], 0 }
   0x4   :  { %14 = vsyncpa [#allocation4], 0 }
   0x5   :  { %16 = vsyncpa [#allocation4 + $0x1], 0  ;;  %s2499_s12 = smov 0   ;;  %s2501_s13 = smov 0  }
   0x6   :  { %s2503_s14 = smov 0   ;;  %s2505_s15 = smov 0  }
   0x7 LB: > { %s2520_s16 = sadd.s32 4294967295, %s2471_s15   ;;  %s1834_s17 = sadd.s32 4294967294, %s2471_s15   ;;  %s2471_s15 = sphi %s2505_s15, %s2894_s15   ;;  %s2467_s14 = sphi %s2503_s14, %s2893_s14   ;;  %s2463_s13 = sphi %s2501_s13, %s2892_s13   ;;  %s2459_s12 = sphi %s2499_s12, %s2891_s12  }
   0x8   : > { %s2524_s18 = sadd.s32 1, %s2471_s15   ;;  %s55_s19 = sadd.s32 1, %s2467_s14 }
   0x9   : > { %s52_s20 = ssub.s32 %s2471_s15, %s2524_s18  ;;  %p62_p0 = scmp.ne.s32.totalorder %s2467_s14, %s2463_s13 }
   0xa   : > { %p53_p1 = scmp.eq.s32.totalorder %s52_s20, 0  ;;  %p63_p2 = scmp.eq.s32.totalorder %s2471_s15, 0 }
   0xb   : > { %p68_p3 = scmp.ne.s32.totalorder %s2463_s13, %s2459_s12  ;;  %p69_p4 = scmp.eq.s32.totalorder %s2520_s16, 0 }
   0xc   : > { %s2536_s21 = scalar_select %p53_p1, %s2467_s14, %s55_s19  }
   0xd   : > { %p2538_p5 = por %p63_p2, %p62_p0  ;;  %p2542_p6 = por %p69_p4, %p68_p3 }
   0xe   : > { %p118_p7 = scmp.eq.s32.totalorder %s2520_s16, 3  ;;  %p124_p8 = scmp.eq.s32.totalorder %s1834_s17, 3 }
   0xf   : > { %s2882_s23 = scalar_select %p2542_p6, 1, 0 }
  0x10   : > { %p2172_p9 = scmp.lt.s32.totalorder %s2471_s15, 4  ;;  %p2548_p10 = por %p118_p7, %p62_p0 }
  0x11   : > { %p2552_p11 = por %p124_p8, %p68_p3  ;;  %s2557_s26 = sand.u32 1, %s2467_s14  }
  0x12   : > { %s2883_s24 = scalar_select %p2548_p10, 1, 0 }
  0x13   : > { %s2884_s25 = scalar_select %p2552_p11, 1, 0 }
  0x14   : > { %s1978_s27 = sshll.u32 %s2471_s15, 14  ;;  %s1837_s28 = sshll.u32 %s2557_s26, 10 }
  0x15   : > { %s2564_s4 = scalar_lea.hbm %s2876_s1, %s1978_s27  ;;  %s155_s5 = scalar_lea.vmem [#allocation2], %s1837_s28 }
  0x16   : > { %s162_s6 = sshll.u32 %s155_s5, 4  ;;  %p2568_p12 = pnand %p2172_p9, %p2538_p5  ;;  %s2572_s6 = int_to_ptr.vmem [resolvable:$true] %s162_s6 }
  0x17   : > { %s152_s8 = scalar_lea.sflag [#allocation3], %s2557_s26  ;;  %s2341_s9 = scalar_lea.hbm %s2564_s4, 16384 }
  0x18   : > { %p2342_p13 = scmp.ne.s32.totalorder %s2564_s4, %s2341_s9  ;;  %p2343_p0 = pneg %p2568_p12 }
  0x19   : > { %s2346_s17 = scalar_lea.hbm %s2876_s1, 65536  ;;  %p2347_p3 = scmp.lt.u32.totalorder %s2564_s4, %s2876_s1 }
  0x1a   : > { %p2344_p1 = pnand %p2343_p0, %p2342_p13  ;;  %p2348_p4 = scmp.lt.u32.totalorder %s2346_s17, %s2341_s9 }
  0x1b   : > { %p2350_p7 = scmp.lt.u32.totalorder %s2341_s9, %s2564_s4 }
  0x1c   : > { %p2345_p2 = pneg %p2344_p1  ;;  %p2349_p5 = por %p2348_p4, %p2347_p3 }
  0x1e   : > { %p2351_p8 = por %p2350_p7, %p2349_p5 }
  0x20   : > { %p2352_p9 = pnand %p2351_p8, %p2345_p2 }
  0x22   : > { %2355 = shalt.err (!%p2352_p9)
}
  0x23   : > { %s2356_s22 = scalar_lea.vmem %s2572_s6, 16384  ;;  %s2473_s27 = smov [#allocation2]  }
  0x24   : > { %p2357_p13 = scmp.ne.s32.totalorder %s2572_s6, %s2356_s22  ;;  %s2361_s28 = sshll.u32 %s2473_s27, 4  ;;  %s2362_s28 = int_to_ptr.vmem [resolvable:$false] %s2361_s28 }
  0x25   : > { %s2363_s29 = scalar_lea.vmem %s2362_s28, 32768  ;;  %p2364_p10 = scmp.lt.s32.totalorder %s2572_s6, %s2362_s28 }
  0x26   : > { %p2359_p1 = pnand %p2357_p13, %p2343_p0  ;;  %p2365_p3 = scmp.lt.s32.totalorder %s2363_s29, %s2356_s22 }
  0x28   : > { %p2360_p11 = pneg %p2359_p1  ;;  %p2366_p4 = por %p2365_p3, %p2364_p10 }
  0x2a   : > { %p2367_p5 = pnand %p2366_p4, %p2360_p11 }
  0x2c   : > { %2370 = shalt.err (!%p2367_p5)
}
  0x2d   : > { %s2474_s30 = smov 64   ;;  %s2475_s5 = smov 4  }
  0x2e   : > { %2164 = dma.hbm_to_vmem [thread:$0]  (!%p2568_p12), %s2564_s4, 16384, %s2572_s6, %s152_s8, %s2474_s30, %s2474_s30, %s2475_s5  }
  0x2f   : > { %p1841_p2 = scmp.ge.s32.totalorder %s2471_s15, 1  ;;  %p187_p7 = scmp.lt.s32.totalorder %s2471_s15, 5 }
  0x30   : > { %s1840_s10 = sshll.u32 %s2471_s15, 4  ;;  %s175_s20 = scalar_lea.vmem [#allocation5], %s2557_s26 }
  0x31   : > { %p2604_p10 = pnand %p1841_p2, %p187_p7  ;;  %s2612_s19 = scalar_lea.hbm %s2877_s2, %s1840_s10 }
  0x32   : > { %s182_s22 = sshll.u32 %s175_s20, 4  ;;  %s173_s4 = scalar_lea.sflag [#allocation6], %s2557_s26  ;;  %s183_s22 = int_to_ptr.vmem [resolvable:$true] %s182_s22 }
  0x33   : > { %s2886_s9 = scalar_select %p2604_p10, 1, 0 }
  0x34   : > { %s2371_s6 = scalar_lea.hbm %s2612_s19, 16  ;;  %s2376_s28 = scalar_lea.hbm %s2877_s2, 64 }
  0x35   : > { %p2372_p11 = scmp.ne.s32.totalorder %s2612_s19, %s2371_s6  ;;  %p2377_p13 = scmp.lt.u32.totalorder %s2612_s19, %s2877_s2 }
  0x36   : > { %p2378_p1 = scmp.lt.u32.totalorder %s2376_s28, %s2371_s6  ;;  %p2380_p4 = scmp.lt.u32.totalorder %s2371_s6, %s2612_s19 }
  0x37   : > { %p2374_p8 = pnand %p2372_p11, %p2343_p0 }
  0x38   : > { %p2379_p3 = por %p2378_p1, %p2377_p13 }
  0x39   : > { %p2375_p9 = pneg %p2374_p8 }
  0x3a   : > { %p2381_p5 = por %p2380_p4, %p2379_p3 }
  0x3c   : > { %p2382_p2 = pnand %p2381_p5, %p2375_p9 }
  0x3e   : > { %2385 = shalt.err (!%p2382_p2)
}
  0x3f   : > { %s2386_s26 = scalar_lea.vmem %s183_s22, 16  ;;  %s2476_s5 = smov [#allocation5]  }
  0x40   : > { %p2387_p7 = scmp.ne.s32.totalorder %s183_s22, %s2386_s26  ;;  %s2391_s10 = sshll.u32 %s2476_s5, 4  ;;  %s2392_s10 = int_to_ptr.vmem [resolvable:$false] %s2391_s10 }
  0x41   : > { %s2393_s11 = scalar_lea.vmem %s2392_s10, 32  ;;  %p2394_p6 = scmp.lt.s32.totalorder %s183_s22, %s2392_s10 }
  0x42   : > { %p2389_p11 = pnand %p2387_p7, %p2343_p0  ;;  %p2395_p10 = scmp.lt.s32.totalorder %s2393_s11, %s2386_s26 }
  0x44   : > { %p2390_p8 = pneg %p2389_p11  ;;  %p2396_p1 = por %p2395_p10, %p2394_p6 }
  0x46   : > { %p2397_p13 = pnand %p2396_p1, %p2390_p8 }
  0x48   : > { %2400 = shalt.err (!%p2397_p13)
}
  0x49   : > { %2167 = dma.hbm_to_vmem [thread:$0]  (!%p2568_p12), %s2612_s19, 16, %s183_s22, %s173_s4  }
  0x4a   : > { %p2887_p9 = scmp.ne.s32.totalorder %s2886_s9, 0 }
  0x4b   : > { %s2638_s17 = sand.u32 (!%p2887_p9), 1, %s2463_s13   ;;  %p2888_p6 = scmp.ne.s32.totalorder (!%p2887_p9), %s2882_s23, 0 }
  0x4c   : > { %191 = sbr.rel (%p2887_p9) target bundleno = 607 (0x25f), region = 32  ;;  %s1842_s20 = sshll.u32 (!%p2887_p9), %s2638_s17, 10 }
  0x4d   : > { %s194_s6 = scalar_lea.sflag (!%p2887_p9), [#allocation3], %s2638_s17  ;;  %s2642_s8 = scalar_lea.vmem (!%p2887_p9), [#allocation2], %s1842_s20 }
  0x53   : > { %2446 = dma.done.wait (%p2888_p6), %s194_s6, 16384  }
  0x54   : > { %2448 = vsyncadd (%p2888_p6), %s194_s6, 4294950912  ;;  %s203_s7 = scalar_lea.sflag [#allocation6], %s2638_s17  ;;  %s205_s9 = scalar_lea.vmem [#allocation5], %s2638_s17 }
  0x55   : > { %2450 = dma.done.wait (%p2888_p6), %s203_s7, 16  }
  0x56   : > { %2452 = vsyncadd (%p2888_p6), %s203_s7, 4294967280  ;;  %v2209_v0 = vld [vmem:[%s2642_s8 + $0x40] sm:$0xff]   ;;  %v2213_v4 = vld [vmem:[%s2642_s8 + $0x48] sm:$0xff]   ;;  %p236_p12 = scmp.lt.s32.totalorder %s2520_s16, 3  ;;  %v2477_v22 = vmov 1966171168   ;;  %v512_v24 = vlaneseq }
  0x57   : > { %v2210_v1 = vld [vmem:[%s2642_s8 + $0xc0] sm:$0xff]   ;;  %1979 = vmatprep.subr.bf16.mxu0 %v2209_v0  ;;  %v2214_v5 = vld [vmem:[%s2642_s8 + $0xc8] sm:$0xff]   ;;  %v2217_v8 = vld [vmem:[%s2642_s8 + $0x50] sm:$0xff]   ;;  %v510_v23 = vunpack.c.l.s4 %v2477_v22  ;;  %vm1711_vm0 = vcmask 1041408   ;;  %s1843_s28 = sshll.u32 %s2638_s17, 1  ;;  %s1975_s29 = sshll.u32 %s2520_s16, 5 }
  0x58   : > { %v2211_v2 = vld [vmem:[%s2642_s8] sm:$0xff]   ;;  %2001 = vmatprep.subr.bf16.mxu1 %v2210_v1  ;;  %v2215_v6 = vld [vmem:[%s2642_s8 + $0x8] sm:$0xff]   ;;  %v2218_v9 = vld [vmem:[%s2642_s8 + $0xd0] sm:$0xff]   ;;  %s237_s23 = scalar_select %p236_p12, %s2520_s16, 3  ;;  %v513_v30 = vshrl.u32 %v512_v24, 7 }
  0x59   : > { %v2212_v3 = vld [vmem:[%s2642_s8 + $0x80] sm:$0xff]   ;;  %1980 = vmatpush3.bf16.msra.mxu0 %v2211_v2  ;;  %v2216_v7 = vld [vmem:[%s2642_s8 + $0x88] sm:$0xff]   ;;  %v2219_v10 = vld [vmem:[%s2642_s8 + $0x10] sm:$0xff]   ;;  %v511_v29 = vunpack.c.0.s8 %v510_v23  ;;  %s235_s30 = scalar_lea.vmem [#allocation7], %s1843_s28  ;;  %s2832_s11 = scalar_lea.hbm %s2878_s3, %s1975_s29 }
  0x5a   : > { %2002 = vmatpush3.bf16.msra.mxu1 %v2212_v3  ;;  %1981 = vmatprep.subr.bf16.mxu0 %v2213_v4  ;;  %v2220_v11 = vld [vmem:[%s2642_s8 + $0x90] sm:$0xff]   ;;  %v2221_v12 = vld [vmem:[%s2642_s8 + $0x58] sm:$0xff]   ;;  %v2225_v16 = vld [vmem:[%s2642_s8 + $0x60] sm:$0xff]   ;;  %s1844_s19 = sshll.u32 %s237_s23, 4  ;;  %s1732_s26 = sshll.u32 %s235_s30, 4  ;;  %s2834_s26 = int_to_ptr.vmem [resolvable:$true] %s1732_s26 }
  0x5b   : > { %2003 = vmatprep.subr.bf16.mxu1 %v2214_v5  ;;  %v2222_v13 = vld [vmem:[%s2642_s8 + $0xd8] sm:$0xff]   ;;  %v2226_v17 = vld [vmem:[%s2642_s8 + $0xe0] sm:$0xff]   ;;  %v2229_v20 = vld [vmem:[%s2642_s8 + $0x68] sm:$0xff]   ;;  %s2689_s27 = scalar_lea.vmem %s2875_s0, %s1844_s19  ;;  %v2691_v35 = vsub.s32 %v511_v29, %v513_v30  ;;  %s1719_s20 = scalar_lea.sflag [#allocation4], %s2638_s17 }
  0x5c   : > { %v2223_v14 = vld [vmem:[%s2642_s8 + $0x18] sm:$0xff]   ;;  %v2227_v18 = vld [vmem:[%s2642_s8 + $0x20] sm:$0xff]   ;;  %v2230_v21 = vld [vmem:[%s2642_s8 + $0xe8] sm:$0xff]   ;;  %s2401_s6 = scalar_lea.vmem %s2834_s26, 32  ;;  %p2889_p10 = scmp.ne.s32.totalorder %s2883_s24, 0 }
  0x5d   : > { %1982 = vmatpush3.bf16.msra.mxu0 %v2215_v6  ;;  %v2224_v15 = vld [vmem:[%s2642_s8 + $0x98] sm:$0xff]   ;;  %v2228_v19 = vld [vmem:[%s2642_s8 + $0xa0] sm:$0xff]   ;;  %v2231_v25 = vld [vmem:[%s2642_s8 + $0x28] sm:$0xff]   ;;  %p2402_p0 = scmp.ne.s32.totalorder %s2834_s26, %s2401_s6  ;;  %s2478_s16 = smov [#allocation7]  }
  0x5e   : > { %2004 = vmatpush3.bf16.msra.mxu1 %v2216_v7  ;;  %1983 = vmatprep.subr.bf16.mxu0 %v2217_v8  ;;  %v2232_v26 = vld [vmem:[%s2642_s8 + $0xa8] sm:$0xff]   ;;  %v2233_v27 = vld [vmem:[%s2642_s8 + $0x70] sm:$0xff]   ;;  %v2237_v33 = vld [vmem:[%s2642_s8 + $0x78] sm:$0xff]  }
  0x5f   : > { %2005 = vmatprep.subr.bf16.mxu1 %v2218_v9  ;;  %v2234_v28 = vld [vmem:[%s2642_s8 + $0xf0] sm:$0xff]   ;;  %v2238_v34 = vld [vmem:[%s2642_s8 + $0xf8] sm:$0xff]   ;;  %v241_v38 = vld [vmem:[%s2689_s27] sm:$0xff]  ;;  %p2403_p3 = pnand %p2402_p0, %p2889_p10 }
  0x60   : > { %v2235_v31 = vld [vmem:[%s2642_s8 + $0x30] sm:$0xff]   ;;  %v2239_v36 = vld [vmem:[%s2642_s8 + $0x38] sm:$0xff]   ;;  %v508_v39 = vcombine.high %v241_v38, %v241_v38  ;;  %v515_v40 = vrot.slane %v241_v38, %v2691_v35  ;;  %v2243_v41 = vld [vmem:[%s2642_s8 + $0x140] sm:$0xff]  }
  0x61   : > { %1984 = vmatpush3.bf16.msra.mxu0 %v2219_v10  ;;  %v2236_v32 = vld [vmem:[%s2642_s8 + $0xb0] sm:$0xff]   ;;  %v2240_v37 = vld [vmem:[%s2642_s8 + $0xb8] sm:$0xff]   ;;  %v2244_v42 = vld [vmem:[%s2642_s8 + $0x1c0] sm:$0xff]   ;;  %p2404_p4 = pneg %p2403_p3 }
  0x62   : > { %2006 = vmatpush3.bf16.msra.mxu1 %v2220_v11  ;;  %1985 = vmatprep.subr.bf16.mxu0 %v2221_v12  ;;  %v523_v43 = vcombine.high %v515_v40, %v515_v40  ;;  %v531_v44 = vrot.slane %v515_v40, %v2691_v35  ;;  %v2701_v45 = vrot.slane %v508_v39, %v2691_v35  ;;  %v2245_v47 = vld [vmem:[%s2642_s8 + $0x100] sm:$0xff]   ;;  %v2247_v50 = vld [vmem:[%s2642_s8 + $0x148] sm:$0xff]   ;;  %v2251_v57 = vld [vmem:[%s2642_s8 + $0x150] sm:$0xff]  }
  0x63   : > { %2007 = vmatprep.subr.bf16.mxu1 %v2222_v13  ;;  %v2246_v52 = vld [vmem:[%s2642_s8 + $0x180] sm:$0xff]   ;;  %v2248_v54 = vld [vmem:[%s2642_s8 + $0x1c8] sm:$0xff]   ;;  %v2252_v59 = vld [vmem:[%s2642_s8 + $0x1d0] sm:$0xff]  }
  0x64   : > { %v545_v46 = vrot.slane %v523_v43, %v2691_v35  ;;  %v524_v48 = vcombine.high %v2701_v45, %v2701_v45  ;;  %v553_v49 = vcombine.high %v531_v44, %v531_v44  ;;  %v2249_v55 = vld [vmem:[%s2642_s8 + $0x108] sm:$0xff]   ;;  %v2253_v60 = vld [vmem:[%s2642_s8 + $0x110] sm:$0xff]   ;;  %v2255_v61 = vld [vmem:[%s2642_s8 + $0x158] sm:$0xff]  }
  0x65   : > { %1986 = vmatpush3.bf16.msra.mxu0 %v2223_v14  ;;  %v2250_v58 = vld [vmem:[%s2642_s8 + $0x188] sm:$0xff]   ;;  %v2254_v62 = vld [vmem:[%s2642_s8 + $0x190] sm:$0xff]   ;;  %v2256_v63 = vld [vmem:[%s2642_s8 + $0x1d8] sm:$0xff]  }
  0x66   : > { %2008 = vmatpush3.bf16.msra.mxu1 %v2224_v15  ;;  %1987 = vmatprep.subr.bf16.mxu0 %v2225_v16  ;;  %v555_v51 = vcombine.high %v545_v46, %v545_v46  ;;  %v552_v53 = vrot.slane %v524_v48, %v2691_v35  ;;  %v2257_v0 = vld [vmem:[%s2642_s8 + $0x118] sm:$0xff]   ;;  %v2259_v1 = vld [vmem:[%s2642_s8 + $0x160] sm:$0xff]   ;;  %v2725_v5 = vld [vmem:[%s2689_s27 + $0x8] sm:$0xff] }
  0x67   : > { %2009 = vmatprep.subr.bf16.mxu1 %v2226_v17  ;;  %1422 = vmatprep.mubr.bf16.mxu0 %v545_v46  ;;  %v2258_v2 = vld [vmem:[%s2642_s8 + $0x198] sm:$0xff]   ;;  %v2260_v3 = vld [vmem:[%s2642_s8 + $0x1e0] sm:$0xff]   ;;  %v2263_v6 = vld [vmem:[%s2642_s8 + $0x168] sm:$0xff]   ;;  %v2735_v12 = vrot.slane %v2725_v5, %v2691_v35  ;;  %v557_v46 = vcombine.high %v2725_v5, %v2725_v5 }
  0x68   : > { %1462 = vmatprep.mubr.bf16.mxu1 %v555_v51  ;;  %v556_v56 = vcombine.high %v552_v53, %v552_v53  ;;  %v2261_v4 = vld [vmem:[%s2642_s8 + $0x120] sm:$0xff]   ;;  %v2264_v8 = vld [vmem:[%s2642_s8 + $0x1e8] sm:$0xff]   ;;  %v2267_v10 = vld [vmem:[%s2642_s8 + $0x170] sm:$0xff]  }
  0x69   : > { %1988 = vmatpush3.bf16.msra.mxu0 %v2227_v18  ;;  %v2262_v7 = vld [vmem:[%s2642_s8 + $0x1a0] sm:$0xff]   ;;  %v2265_v9 = vld [vmem:[%s2642_s8 + $0x128] sm:$0xff]   ;;  %v2268_v13 = vld [vmem:[%s2642_s8 + $0x1f0] sm:$0xff]   ;;  %v572_v17 = vcombine.high %v2735_v12, %v2735_v12 }
  0x6a   : > { %2010 = vmatpush3.bf16.msra.mxu1 %v2228_v19  ;;  %1989 = vmatprep.subr.bf16.mxu0 %v2229_v20  ;;  %v2266_v11 = vld [vmem:[%s2642_s8 + $0x1a8] sm:$0xff]   ;;  %v2269_v14 = vld [vmem:[%s2642_s8 + $0x130] sm:$0xff]   ;;  %v2271_v15 = vld [vmem:[%s2642_s8 + $0x178] sm:$0xff]   ;;  %v538_v20 = vrot.slane %v2701_v45, %v2691_v35 }
  0x6b   : > { %2011 = vmatprep.subr.bf16.mxu1 %v2230_v21  ;;  %v2270_v16 = vld [vmem:[%s2642_s8 + $0x1b0] sm:$0xff]   ;;  %v2272_v18 = vld [vmem:[%s2642_s8 + $0x1f8] sm:$0xff]   ;;  %v2275_v21 = vld [vmem:[%s2642_s8 + $0x240] sm:$0xff]   ;;  %v594_v23 = vrot.slane %v572_v17, %v2691_v35 }
  0x6c   : > { %v2273_v19 = vld [vmem:[%s2642_s8 + $0x138] sm:$0xff]   ;;  %v2276_v24 = vld [vmem:[%s2642_s8 + $0x2c0] sm:$0xff]   ;;  %v2280_v30 = vld [vmem:[%s2642_s8 + $0x2c8] sm:$0xff]  }
  0x6d   : > { %1990 = vmatpush3.bf16.msra.mxu0 %v2231_v25  ;;  %v2274_v22 = vld [vmem:[%s2642_s8 + $0x1b8] sm:$0xff]   ;;  %v2277_v25 = vld [vmem:[%s2642_s8 + $0x200] sm:$0xff]   ;;  %v604_v29 = vcombine.high %v594_v23, %v594_v23  ;;  %v2286_v38 = vld [vmem:[%s2642_s8 + $0x290] sm:$0xff]  }
  0x6e   : > { %2012 = vmatpush3.bf16.msra.mxu1 %v2232_v26  ;;  %1991 = vmatprep.subr.bf16.mxu0 %v2233_v27  ;;  %v554_v26 = vcombine.high %v538_v20, %v538_v20  ;;  %v2279_v27 = vld [vmem:[%s2642_s8 + $0x248] sm:$0xff]   ;;  %v2288_v39 = vld [vmem:[%s2642_s8 + $0x2d8] sm:$0xff]   ;;  %v2292_v43 = vld [vmem:[%s2642_s8 + $0x2e0] sm:$0xff]  }
  0x6f   : > { %2013 = vmatprep.subr.bf16.mxu1 %v2234_v28  ;;  %v2278_v28 = vld [vmem:[%s2642_s8 + $0x280] sm:$0xff]   ;;  %v2289_v40 = vld [vmem:[%s2642_s8 + $0x218] sm:$0xff]   ;;  %v2295_v45 = vld [vmem:[%s2642_s8 + $0x268] sm:$0xff]  }
  0x70   : > { %v2296_v48 = vld [vmem:[%s2642_s8 + $0x2e8] sm:$0xff]   ;;  %v2322_v17 = vld [vmem:[%s2642_s8 + $0x398] sm:$0xff]  }
  0x71   : > { %1992 = vmatpush3.bf16.msra.mxu0 %v2235_v31  ;;  %v2281_v31 = vld [vmem:[%s2642_s8 + $0x208] sm:$0xff]  }
  0x72   : > { %2014 = vmatpush3.bf16.msra.mxu1 %v2236_v32  ;;  %1993 = vmatprep.subr.bf16.mxu0 %v2237_v33  ;;  %v2283_v32 = vld [vmem:[%s2642_s8 + $0x250] sm:$0xff]   ;;  %v2282_v33 = vld [vmem:[%s2642_s8 + $0x288] sm:$0xff]  }
  0x73   : > { %2015 = vmatprep.subr.bf16.mxu1 %v2238_v34  ;;  %v2284_v34 = vld [vmem:[%s2642_s8 + $0x2d0] sm:$0xff]   ;;  %v2298_v51 = vld [vmem:[%s2642_s8 + $0x2a8] sm:$0xff]  }
  0x75   : > { %1994 = vmatpush3.bf16.msra.mxu0 %v2239_v36  ;;  %v2285_v36 = vld [vmem:[%s2642_s8 + $0x210] sm:$0xff]  }
  0x76   : > { %2016 = vmatpush3.bf16.msra.mxu1 %v2240_v37  ;;  %2023 = vmatprep.subr.bf16.mxu0 %v2243_v41  ;;  %v2287_v37 = vld [vmem:[%s2642_s8 + $0x258] sm:$0xff]   ;;  %v2291_v41 = vld [vmem:[%s2642_s8 + $0x260] sm:$0xff]  }
  0x77   : > { %2045 = vmatprep.subr.bf16.mxu1 %v2244_v42  ;;  %v2290_v42 = vld [vmem:[%s2642_s8 + $0x298] sm:$0xff]  }
  0x78   : > { %1423 = vmatmul.mubr.bf16.vlgmr.msra.gmra.mrb[0].mxu0 %v531_v44  ;;  %v2293_v44 = vld [vmem:[%s2642_s8 + $0x220] sm:$0xff]  }
  0x79   : > { %2024 = vmatpush3.bf16.msra.mxu0 %v2245_v47  ;;  %1463 = vmatmul.mubr.bf16.vlgmr.msra.gmra.mrb[0].mxu1 %v553_v49  ;;  %v2294_v47 = vld [vmem:[%s2642_s8 + $0x2a0] sm:$0xff]   ;;  %v2297_v49 = vld [vmem:[%s2642_s8 + $0x228] sm:$0xff]  }
  0x7a   : > { %2025 = vmatprep.subr.bf16.mxu0 %v2247_v50  ;;  %2046 = vmatpush3.bf16.msra.mxu1 %v2246_v52  ;;  %v2299_v50 = vld [vmem:[%s2642_s8 + $0x270] sm:$0xff]   ;;  %v2777_v52 = vrot.slane %v557_v46, %v2691_v35 }
  0x7b   : > { %1502 = vmatprep.mubr.bf16.mxu0 %v552_v53  ;;  %2047 = vmatprep.subr.bf16.mxu1 %v2248_v54  ;;  %v2300_v53 = vld [vmem:[%s2642_s8 + $0x2f0] sm:$0xff]  }
  0x7c   : > { %1542 = vmatprep.mubr.bf16.mxu1 %v556_v56  ;;  %v2301_v54 = vld [vmem:[%s2642_s8 + $0x230] sm:$0xff]  }
  0x7d   : > { %2026 = vmatpush3.bf16.msra.mxu0 %v2249_v55  ;;  %v2303_v55 = vld [vmem:[%s2642_s8 + $0x278] sm:$0xff]   ;;  %v2302_v56 = vld [vmem:[%s2642_s8 + $0x2b0] sm:$0xff]  }
  0x7e   : > { %2027 = vmatprep.subr.bf16.mxu0 %v2251_v57  ;;  %2048 = vmatpush3.bf16.msra.mxu1 %v2250_v58  ;;  %v573_v57 = vcombine.high %v2777_v52, %v2777_v52  ;;  %v2304_v58 = vld [vmem:[%s2642_s8 + $0x2f8] sm:$0xff]  }
  0x7f   : > { %2049 = vmatprep.subr.bf16.mxu1 %v2252_v59  ;;  %v2305_v59 = vld [vmem:[%s2642_s8 + $0x238] sm:$0xff]  }
  0x81   : > { %2028 = vmatpush3.bf16.msra.mxu0 %v2253_v60  ;;  %v580_v60 = vrot.slane %v2735_v12, %v2691_v35  ;;  %v2319_v12 = vld [vmem:[%s2642_s8 + $0x358] sm:$0xff]  }
  0x82   : > { %2029 = vmatprep.subr.bf16.mxu0 %v2255_v61  ;;  %2050 = vmatpush3.bf16.msra.mxu1 %v2254_v62  ;;  %v2307_v61 = vld [vmem:[%s2642_s8 + $0x340] sm:$0xff]   ;;  %v2306_v62 = vld [vmem:[%s2642_s8 + $0x2b8] sm:$0xff]  }
  0x83   : > { %2051 = vmatprep.subr.bf16.mxu1 %v2256_v63  ;;  %v601_v63 = vrot.slane %v573_v57, %v2691_v35 }
  0x85   : > { %2030 = vmatpush3.bf16.msra.mxu0 %v2257_v0  ;;  %v2308_v0 = vld [vmem:[%s2642_s8 + $0x3c0] sm:$0xff]   ;;  %v605_v5 = vcombine.high %v601_v63, %v601_v63 }
  0x86   : > { %2031 = vmatprep.subr.bf16.mxu0 %v2259_v1  ;;  %2052 = vmatpush3.bf16.msra.mxu1 %v2258_v2  ;;  %v2309_v1 = vld [vmem:[%s2642_s8 + $0x300] sm:$0xff]   ;;  %v602_v2 = vcombine.high %v580_v60, %v580_v60 }
  0x87   : > { %2053 = vmatprep.subr.bf16.mxu1 %v2260_v3  ;;  %v2311_v3 = vld [vmem:[%s2642_s8 + $0x348] sm:$0xff]  }
  0x89   : > { %2032 = vmatpush3.bf16.msra.mxu0 %v2261_v4  ;;  %v2310_v4 = vld [vmem:[%s2642_s8 + $0x380] sm:$0xff]  }
  0x8a   : > { %2033 = vmatprep.subr.bf16.mxu0 %v2263_v6  ;;  %2054 = vmatpush3.bf16.msra.mxu1 %v2262_v7  ;;  %v2312_v6 = vld [vmem:[%s2642_s8 + $0x3c8] sm:$0xff]  }
  0x8b   : > { %2055 = vmatprep.subr.bf16.mxu1 %v2264_v8  ;;  %v2313_v7 = vld [vmem:[%s2642_s8 + $0x308] sm:$0xff]   ;;  %v2315_v8 = vld [vmem:[%s2642_s8 + $0x350] sm:$0xff]  }
  0x8d   : > { %2034 = vmatpush3.bf16.msra.mxu0 %v2265_v9  ;;  %v2314_v9 = vld [vmem:[%s2642_s8 + $0x388] sm:$0xff]  }
  0x8e   : > { %2035 = vmatprep.subr.bf16.mxu0 %v2267_v10  ;;  %2056 = vmatpush3.bf16.msra.mxu1 %v2266_v11  ;;  %v2316_v10 = vld [vmem:[%s2642_s8 + $0x3d0] sm:$0xff]  }
  0x8f   : > { %2057 = vmatprep.subr.bf16.mxu1 %v2268_v13  ;;  %v2317_v11 = vld [vmem:[%s2642_s8 + $0x310] sm:$0xff]  }
  0x90   : > { %v2318_v13 = vld [vmem:[%s2642_s8 + $0x390] sm:$0xff]  }
  0x91   : > { %2036 = vmatpush3.bf16.msra.mxu0 %v2269_v14  ;;  %v2320_v14 = vld [vmem:[%s2642_s8 + $0x3d8] sm:$0xff]  }
  0x92   : > { %2037 = vmatprep.subr.bf16.mxu0 %v2271_v15  ;;  %2058 = vmatpush3.bf16.msra.mxu1 %v2270_v16  ;;  %v2321_v15 = vld [vmem:[%s2642_s8 + $0x318] sm:$0xff]   ;;  %v2323_v16 = vld [vmem:[%s2642_s8 + $0x360] sm:$0xff]  }
  0x93   : > { %2059 = vmatprep.subr.bf16.mxu1 %v2272_v18  ;;  %v2324_v18 = vld [vmem:[%s2642_s8 + $0x3e0] sm:$0xff]  }
  0x95   : > { %2038 = vmatpush3.bf16.msra.mxu0 %v2273_v19  ;;  %v2325_v19 = vld [vmem:[%s2642_s8 + $0x320] sm:$0xff]  }
  0x96   : > { %2067 = vmatprep.subr.bf16.mxu0 %v2275_v21  ;;  %2060 = vmatpush3.bf16.msra.mxu1 %v2274_v22  ;;  %v2326_v21 = vld [vmem:[%s2642_s8 + $0x3a0] sm:$0xff]   ;;  %v2328_v22 = vld [vmem:[%s2642_s8 + $0x3e8] sm:$0xff]  }
  0x97   : > { %2089 = vmatprep.subr.bf16.mxu1 %v2276_v24  ;;  %v2331_v24 = vld [vmem:[%s2642_s8 + $0x370] sm:$0xff]  }
  0x98   : > { %1503 = vmatmul.mubr.bf16.vlgmr.msra.gmra.mrb[4].mxu0 %v538_v20  ;;  %v2327_v20 = vld [vmem:[%s2642_s8 + $0x368] sm:$0xff]  }
  0x99   : > { %2068 = vmatpush3.bf16.msra.mxu0 %v2277_v25  ;;  %1582 = vmatprep.mubr.bf16.mxu0 %v594_v23  ;;  %v2329_v23 = vld [vmem:[%s2642_s8 + $0x328] sm:$0xff]  }
  0x9a   : > { %1543 = vmatmul.mubr.bf16.vlgmr.msra.gmra.mrb[4].mxu1 %v554_v26  ;;  %2069 = vmatprep.subr.bf16.mxu0 %v2279_v27  ;;  %v2330_v25 = vld [vmem:[%s2642_s8 + $0x3a8] sm:$0xff]   ;;  %v2332_v26 = vld [vmem:[%s2642_s8 + $0x3f0] sm:$0xff]  }
  0x9b   : > { %2090 = vmatpush3.bf16.msra.mxu1 %v2278_v28  ;;  %1622 = vmatprep.mubr.bf16.mxu1 %v604_v29  ;;  %v2333_v27 = vld [vmem:[%s2642_s8 + $0x330] sm:$0xff]   ;;  %v2335_v28 = vld [vmem:[%s2642_s8 + $0x378] sm:$0xff]  }
  0x9c   : > { %2091 = vmatprep.subr.bf16.mxu1 %v2280_v30  ;;  %v2334_v29 = vld [vmem:[%s2642_s8 + $0x3b0] sm:$0xff]   ;;  %v2336_v30 = vld [vmem:[%s2642_s8 + $0x3f8] sm:$0xff]  }
  0x9d   : > { %2070 = vmatpush3.bf16.msra.mxu0 %v2281_v31  ;;  %v2337_v31 = vld [vmem:[%s2642_s8 + $0x338] sm:$0xff]  }
  0x9e   : > { %2071 = vmatprep.subr.bf16.mxu0 %v2283_v32  ;;  %v587_v32 = vrot.slane %v2777_v52, %v2691_v35 }
  0x9f   : > { %2092 = vmatpush3.bf16.msra.mxu1 %v2282_v33  ;;  %v2338_v33 = vld [vmem:[%s2642_s8 + $0x3b8] sm:$0xff]   ;;  %s2405_s8 = sshll.u32 %s2478_s16, 4  ;;  %s2406_s8 = int_to_ptr.vmem [resolvable:$false] %s2405_s8 }
  0xa0   : > { %2093 = vmatprep.subr.bf16.mxu1 %v2284_v34  ;;  %v603_v34 = vcombine.high %v587_v32, %v587_v32  ;;  %s2407_s7 = scalar_lea.vmem %s2406_s8, 64  ;;  %p2408_p5 = scmp.lt.s32.totalorder %s2834_s26, %s2406_s8 }
  0xa1   : > { %2072 = vmatpush3.bf16.msra.mxu0 %v2285_v36  ;;  %p2409_p2 = scmp.lt.s32.totalorder %s2407_s7, %s2401_s6 }
  0xa2   : > { %2073 = vmatprep.subr.bf16.mxu0 %v2287_v37  ;;  %v1845_v37 = vld [vmem:[%s205_s9] ss:$0 sm:$0xff] }
  0xa3   : > { %2094 = vmatpush3.bf16.msra.mxu1 %v2286_v38  ;;  %p2410_p7 = por %p2409_p2, %p2408_p5 }
  0xa4   : > { %2095 = vmatprep.subr.bf16.mxu1 %v2288_v39 }
  0xa5   : > { %2074 = vmatpush3.bf16.msra.mxu0 %v2289_v40  ;;  %p2411_p11 = pnand %p2410_p7, %p2404_p4 }
  0xa6   : > { %2075 = vmatprep.subr.bf16.mxu0 %v2291_v41 }
  0xa7   : > { %2096 = vmatpush3.bf16.msra.mxu1 %v2290_v42 }
  0xa8   : > { %2097 = vmatprep.subr.bf16.mxu1 %v2292_v43 }
  0xa9   : > { %2076 = vmatpush3.bf16.msra.mxu0 %v2293_v44 }
  0xaa   : > { %2077 = vmatprep.subr.bf16.mxu0 %v2295_v45 }
  0xab   : > { %2098 = vmatpush3.bf16.msra.mxu1 %v2294_v47 }
  0xac   : > { %2099 = vmatprep.subr.bf16.mxu1 %v2296_v48 }
  0xad   : > { %2078 = vmatpush3.bf16.msra.mxu0 %v2297_v49 }
  0xae   : > { %2079 = vmatprep.subr.bf16.mxu0 %v2299_v50 }
  0xaf   : > { %2100 = vmatpush3.bf16.msra.mxu1 %v2298_v51 }
  0xb0   : > { %2101 = vmatprep.subr.bf16.mxu1 %v2300_v53 }
  0xb1   : > { %2080 = vmatpush3.bf16.msra.mxu0 %v2301_v54 }
  0xb2   : > { %2081 = vmatprep.subr.bf16.mxu0 %v2303_v55 }
  0xb3   : > { %2102 = vmatpush3.bf16.msra.mxu1 %v2302_v56 }
  0xb4   : > { %2103 = vmatprep.subr.bf16.mxu1 %v2304_v58 }
  0xb5   : > { %2082 = vmatpush3.bf16.msra.mxu0 %v2305_v59 }
  0xb6   : > { %2111 = vmatprep.subr.bf16.mxu0 %v2307_v61 }
  0xb7   : > { %2104 = vmatpush3.bf16.msra.mxu1 %v2306_v62 }
  0xb8   : > { %1583 = vmatmul.mubr.bf16.vlgmr.msra.gmra.mrb[8].mxu0 %v580_v60  ;;  %2133 = vmatprep.subr.bf16.mxu1 %v2308_v0 }
  0xb9   : > { %2112 = vmatpush3.bf16.msra.mxu0 %v2309_v1  ;;  %1662 = vmatprep.mubr.bf16.mxu0 %v601_v63 }
  0xba   : > { %1623 = vmatmul.mubr.bf16.vlgmr.msra.gmra.mrb[8].mxu1 %v602_v2  ;;  %2113 = vmatprep.subr.bf16.mxu0 %v2311_v3 }
  0xbb   : > { %2134 = vmatpush3.bf16.msra.mxu1 %v2310_v4  ;;  %1702 = vmatprep.mubr.bf16.mxu1 %v605_v5 }
  0xbc   : > { %2135 = vmatprep.subr.bf16.mxu1 %v2312_v6 }
  0xbd   : > { %2114 = vmatpush3.bf16.msra.mxu0 %v2313_v7 }
  0xbe   : > { %2115 = vmatprep.subr.bf16.mxu0 %v2315_v8 }
  0xbf   : > { %2136 = vmatpush3.bf16.msra.mxu1 %v2314_v9 }
  0xc0   : > { %2137 = vmatprep.subr.bf16.mxu1 %v2316_v10 }
  0xc1   : > { %2116 = vmatpush3.bf16.msra.mxu0 %v2317_v11 }
  0xc2   : > { %2117 = vmatprep.subr.bf16.mxu0 %v2319_v12 }
  0xc3   : > { %2138 = vmatpush3.bf16.msra.mxu1 %v2318_v13 }
  0xc4   : > { %2139 = vmatprep.subr.bf16.mxu1 %v2320_v14 }
  0xc5   : > { %2118 = vmatpush3.bf16.msra.mxu0 %v2321_v15 }
  0xc6   : > { %2119 = vmatprep.subr.bf16.mxu0 %v2323_v16 }
  0xc7   : > { %2140 = vmatpush3.bf16.msra.mxu1 %v2322_v17 }
  0xc8   : > { %2141 = vmatprep.subr.bf16.mxu1 %v2324_v18 }
  0xc9   : > { %2120 = vmatpush3.bf16.msra.mxu0 %v2325_v19 }
  0xca   : > { %2121 = vmatprep.subr.bf16.mxu0 %v2327_v20 }
  0xcb   : > { %2142 = vmatpush3.bf16.msra.mxu1 %v2326_v21 }
  0xcc   : > { %2143 = vmatprep.subr.bf16.mxu1 %v2328_v22 }
  0xcd   : > { %2122 = vmatpush3.bf16.msra.mxu0 %v2329_v23 }
  0xce   : > { %2123 = vmatprep.subr.bf16.mxu0 %v2331_v24 }
  0xcf   : > { %2144 = vmatpush3.bf16.msra.mxu1 %v2330_v25 }
  0xd0   : > { %2145 = vmatprep.subr.bf16.mxu1 %v2332_v26 }
  0xd1   : > { %2124 = vmatpush3.bf16.msra.mxu0 %v2333_v27 }
  0xd2   : > { %2125 = vmatprep.subr.bf16.mxu0 %v2335_v28 }
  0xd3   : > { %2146 = vmatpush3.bf16.msra.mxu1 %v2334_v29 }
  0xd4   : > { %2147 = vmatprep.subr.bf16.mxu1 %v2336_v30 }
  0xd5   : > { %2126 = vmatpush3.bf16.msra.mxu0 %v2337_v31 }
  0xd7   : > { %2148 = vmatpush3.bf16.msra.mxu1 %v2338_v33 }
  0xd8   : > { %1663 = vmatmul.mubr.bf16.vlgmr.msra.gmra.mrb[12].mxu0 %v587_v32 }
  0xda   : > { %1703 = vmatmul.mubr.bf16.vlgmr.msra.gmra.mrb[12].mxu1 %v603_v34 }
 0x14b   : > { %v1995_v36 = vpop.f32.mrb[0].mxu0 }
 0x14c   : > { %v1996_v38 = vpop.f32.mrb[1].mxu0  ;;  %v2017_v39 = vpop.f32.mrb[0].mxu1 }
 0x14d   : > { %v1997_v40 = vadd.f32 %v1996_v38, %v1995_v36  ;;  %v1998_v41 = vpop.f32.mrb[2].mxu0  ;;  %v2018_v42 = vpop.f32.mrb[1].mxu1 }
 0x14e   : > { %v1999_v43 = vpop.f32.mrb[3].mxu0  ;;  %v2019_v45 = vadd.f32 %v2018_v42, %v2017_v39  ;;  %v2020_v35 = vpop.f32.mrb[2].mxu1 }
 0x14f   : > { %v1425_v44 = vadd.f32 %v1997_v40, %v1845_v37  ;;  %v2021_v46 = vpop.f32.mrb[3].mxu1 }
 0x151   : > { %v1465_v47 = vadd.f32 %v2019_v45, %v1425_v44 }
 0x16b   : > { %v2039_v48 = vpop.f32.mrb[4].mxu0 }
 0x16c   : > { %v2040_v49 = vpop.f32.mrb[5].mxu0 }
 0x16d   : > { %v2061_v50 = vpop.f32.mrb[4].mxu1  ;;  %v2041_v51 = vadd.f32 %v2040_v49, %v2039_v48  ;;  %v2042_v52 = vpop.f32.mrb[6].mxu0 }
 0x16e   : > { %v2062_v53 = vpop.f32.mrb[5].mxu1  ;;  %v2043_v54 = vpop.f32.mrb[7].mxu0 }
 0x16f   : > { %v1505_v55 = vadd.f32 %v2041_v51, %v1465_v47  ;;  %v2063_v56 = vadd.f32 %v2062_v53, %v2061_v50  ;;  %v2064_v57 = vpop.f32.mrb[6].mxu1 }
 0x170   : > { %v2065_v58 = vpop.f32.mrb[7].mxu1 }
 0x171   : > { %v1545_v59 = vadd.f32 %v2063_v56, %v1505_v55 }
 0x18b   : > { %v2083_v60 = vpop.f32.mrb[8].mxu0 }
 0x18c   : > { %v2084_v61 = vpop.f32.mrb[9].mxu0 }
 0x18d   : > { %v2105_v62 = vpop.f32.mrb[8].mxu1  ;;  %v2085_v63 = vadd.f32 %v2084_v61, %v2083_v60  ;;  %v2086_v0 = vpop.f32.mrb[10].mxu0 }
 0x18e   : > { %v2106_v1 = vpop.f32.mrb[9].mxu1  ;;  %v2087_v2 = vpop.f32.mrb[11].mxu0 }
 0x18f   : > { %v1585_v3 = vadd.f32 %v2085_v63, %v1545_v59  ;;  %v2107_v4 = vadd.f32 %v2106_v1, %v2105_v62  ;;  %v2108_v5 = vpop.f32.mrb[10].mxu1 }
 0x190   : > { %v2109_v6 = vpop.f32.mrb[11].mxu1 }
 0x191   : > { %v1625_v7 = vadd.f32 %v2107_v4, %v1585_v3 }
 0x1ab   : > { %v2127_v8 = vpop.f32.mrb[12].mxu0 }
 0x1ac   : > { %v2128_v9 = vpop.f32.mrb[13].mxu0 }
 0x1ad   : > { %v2149_v10 = vpop.f32.mrb[12].mxu1  ;;  %v2129_v11 = vadd.f32 %v2128_v9, %v2127_v8  ;;  %v2130_v12 = vpop.f32.mrb[14].mxu0 }
 0x1ae   : > { %v2150_v13 = vpop.f32.mrb[13].mxu1  ;;  %v2131_v14 = vpop.f32.mrb[15].mxu0 }
 0x1af   : > { %v1665_v15 = vadd.f32 %v2129_v11, %v1625_v7  ;;  %v2151_v16 = vadd.f32 %v2150_v13, %v2149_v10  ;;  %v2152_v17 = vpop.f32.mrb[14].mxu1 }
 0x1b0   : > { %v2153_v18 = vpop.f32.mrb[15].mxu1 }
 0x1b1   : > { %v1705_v19 = vadd.f32 %v2151_v16, %v1665_v15 }
 0x1b3   : > { %v1710_v20 = vmul.f32 %v1705_v19, %v1705_v19 }
 0x1b5   : > { %v1712_v21 = vsel %vm1711_vm0, %v1710_v20, 0.0 }
 0x1b6   : > { %1713 = vadd.xlane.f32.xlu0 %v1712_v21 }
 0x243   : > { %v1714_v22 = vpop.xlane.xlu0 %1713 }
 0x244   : > { %2339 = vrsqrt.f32 %v1714_v22 }
 0x24e   : > { %v2340_v23 = vpop.eup %2339 }
 0x24f   : > { %v1716_v24 = vmul.f32 %v2340_v23, %v1705_v19 }
 0x251   : > { %1717 = vst [vmem:[%s235_s30] sm:$0x3] %v1716_v24 }
 0x252   : > { %2414 = shalt.err (!%p2411_p11)
}
 0x253   : > { %s2415_s17 = scalar_lea.hbm %s2832_s11, 32  ;;  %s2419_s19 = scalar_lea.hbm %s2878_s3, 128 }
 0x254   : > { %p2416_p8 = scmp.ne.s32.totalorder %s2832_s11, %s2415_s17  ;;  %p2420_p9 = scmp.lt.u32.totalorder %s2832_s11, %s2878_s3 }
 0x255   : > { %p2421_p6 = scmp.lt.u32.totalorder %s2419_s19, %s2415_s17  ;;  %p2423_p0 = scmp.lt.u32.totalorder %s2415_s17, %s2832_s11 }
 0x256   : > { %p2417_p1 = pnand %p2416_p8, %p2889_p10 }
 0x257   : > { %p2422_p12 = por %p2421_p6, %p2420_p9 }
 0x258   : > { %p2418_p13 = pneg %p2417_p1 }
 0x259   : > { %p2424_p3 = por %p2423_p0, %p2422_p12 }
 0x25b   : > { %p2425_p4 = pnand %p2424_p3, %p2418_p13 }
 0x25d   : > { %2428 = shalt.err (!%p2425_p4)
}
 0x25e   : > { %2159 = dma.vmem_to_hbm [thread:$0]  (%p2889_p10), %s2834_s26, 32, %s2832_s11, %s1719_s20  }
 0x25f PF: > { %p2173_p5 = scmp.ge.s32.totalorder %s2471_s15, 2  ;;  %s1744_s27 = sand.u32 1, %s2459_s12  }
 0x260   : > { %p2890_p2 = scmp.ne.s32.totalorder %s2884_s25, 0  ;;  %s1745_s28 = scalar_lea.sflag [#allocation4], %s1744_s27 }
 0x262   : > { %p2169_p7 = pnand %p2173_p5, %p2890_p2 }
 0x264   : > { %2454 = dma.done.wait (!%p2169_p7), %s1745_s28, 32  }
 0x265   : > { %2456 = vsyncadd (!%p2169_p7), %s1745_s28, 4294967264  ;;  %p19_p11 = scmp.ge.s32.totalorder %s2524_s18, 6   ;;  %s2891_s12 = smov %s2463_s13 }
 0x266   : > { %s2892_s13 = smov %s2467_s14  ;;  %s2893_s14 = smov %s2536_s21 }
 0x267   : > { %s2894_s15 = smov %s2524_s18  ;;  %21 = sbr.rel (!%p19_p11) target bundleno = 7 (0x7), region = 93 }
 0x26e   :  { %1750 = vsyncpa [#allocation3], 1 }
 0x26f   :  { %1752 = vsyncpa [#allocation3 + $0x1], 1 }
 0x270   :  { %1753 = vsyncpa [#allocation6], 1 }
 0x271   :  { %1755 = vsyncpa [#allocation6 + $0x1], 1 }
 0x272   :  { %1756 = vsyncpa [#allocation4], 1 }
 0x273   :  { %1758 = vsyncpa [#allocation4 + $0x1], 1 }

</bundles_post_ra>
